<compile_context>
chip_gen: v7x
topology: tpu7x:2x2x1
jax: 0.10.0
libtpu: 0.0.40
codegen_flags: <defaults>
</compile_context>

<pallas_src>
import jax
import jax.numpy as jnp
from jax.experimental import pallas as pl
from jax.experimental.pallas import tpu as pltpu


def encoder_layer_kernel(x_ref, q_ref, k_ref, v_ref, mask_ref,
                         wout_ref, bout_ref, w1_ref, b1_ref, w2_ref, b2_ref,
                         res_ref, o_ref):
    """Grid step = (batch element, query-row tile). Weights stay resident."""
    xq = x_ref[0]            # (TQ, E)  residual input rows (f32)
    q = q_ref[0]             # (H, TQ, Dh)  1/sqrt(Dh) already folded in
    k = k_ref[0]             # (H, S,  Dh)
    v = v_ref[0]             # (H, S,  Dh)
    mask = mask_ref[...]     # (TQ, S) additive float mask rows
    res = res_ref[0, 0]      # scalar resweight (SMEM, scalar path)
    H = q.shape[0]

    # ---- scaled-dot-product attention, all heads in one batched einsum ----
    s = jnp.einsum("hqd,hkd->hqk", q, k,
                   preferred_element_type=jnp.float32) + mask[None]
    m = jnp.max(s, axis=-1, keepdims=True)
    p = jnp.exp(s - m)
    l = jnp.sum(p, axis=-1, keepdims=True)
    # NOTE: a fully-masked row (all -inf) would give NaN (0/0), matching the
    # usual softmax caveat; the float mask in this module never does that.
    p = p * pl.reciprocal(l, approx=True)          # EUP slot, not a VPU divide
    ctx = jnp.einsum("hqk,hkd->hqd", p.astype(v.dtype), v,
                     preferred_element_type=jnp.float32)      # (H, TQ, Dh)

    # ---- out-projection: sum_h ctx_h @ Wout_h, accumulated matmul-by-matmul
    # so the head reduction never materializes an (H, TQ, E) intermediate. ----
    wout = wout_ref[...]                                      # (H, Dh, E)
    attn = jnp.dot(ctx[0].astype(wout.dtype), wout[0],
                   preferred_element_type=jnp.float32)
    for h in range(1, H):
        attn = attn + jnp.dot(ctx[h].astype(wout.dtype), wout[h],
                              preferred_element_type=jnp.float32)
    attn = attn + bout_ref[...]                               # (TQ, E)

    src = xq + res * attn                     # dropout1 = identity (eval)

    # ---- position-wise feed-forward + ReZero residual ----
    w1 = w1_ref[...]
    w2 = w2_ref[...]
    hdn = jnp.dot(src.astype(w1.dtype), w1,
                  preferred_element_type=jnp.float32) + b1_ref[...]
    hdn = jnp.maximum(hdn, 0.0)               # relu; dropout = identity (eval)
    ffn = jnp.dot(hdn.astype(w2.dtype), w2,
                  preferred_element_type=jnp.float32) + b2_ref[...]
    o_ref[0] = (src + res * ffn).astype(o_ref.dtype)   # dropout2 = identity


def encoder_layer(x, mask, params, *, n_heads, tq=None,
                  compute_dtype=jnp.float32):
    B, S, E = x.shape
    PF = params["w1_t"].shape[1]
    H = n_heads
    assert E % H == 0, "hid_dim must be divisible by n_heads"
    Dh = E // H

    # Query-row tile.  Bigger tiles amortize the ~0.35us/step overhead and
    # give the MXU a larger M per weight load; use 256 on v5e/v6e (128 MiB
    # VMEM) and 128 on v7x (64 MiB) at production sizes.
    if tq is None:
        tq = S if S <= 256 else 256
    assert S % tq == 0 and (tq == S or tq % 8 == 0)
    nq = S // tq

    # ---- fused, lane-dense QKV projection done ONCE in plain JAX/XLA ----
    # Fold 1/sqrt(Dh) into the Q columns (weights + bias) so the kernel never
    # multiplies by the scale.
    scale = 1.0 / (Dh ** 0.5)
    col_scale = jnp.concatenate([jnp.full((E,), scale, jnp.float32),
                                 jnp.ones((2 * E,), jnp.float32)])
    w_in_t = params["w_in_t"] * col_scale[None, :]       # (E, 3E)
    b_in = params["b_in"] * col_scale[None, :]           # (1, 3E)

    qkv = x.reshape(B * S, E) @ w_in_t + b_in            # one (.,E)x(E,3E) GEMM
    qkv = qkv.reshape(B, S, 3, H, Dh).transpose(2, 0, 3, 1, 4)  # (3,B,H,S,Dh)
    q_h = qkv[0].astype(compute_dtype)
    k_h = qkv[1].astype(compute_dtype)
    v_h = qkv[2].astype(compute_dtype)

    # Out-projection weight in per-head-row layout (pure reshape, no copy).
    wout_h = params["w_out_t"].reshape(H, Dh, E).astype(compute_dtype)
    w1_t = params["w1_t"].astype(compute_dtype)
    w2_t = params["w2_t"].astype(compute_dtype)
    resw = params["resweight"].reshape(1, 1).astype(jnp.float32)

    # Grid-invariant weight/bias specs: single-buffered (they never change).
    def wspec(shape):
        return pl.BlockSpec(shape, lambda b, t: (0,) * len(shape),
                            pipeline_mode=pl.Buffered(1))

    in_specs = [
        pl.BlockSpec((1, tq, E), lambda b, t: (b, t, 0)),         # x rows
        pl.BlockSpec((1, H, tq, Dh), lambda b, t: (b, 0, t, 0)),  # Q heads, tile
        pl.BlockSpec((1, H, S, Dh), lambda b, t: (b, 0, 0, 0)),   # K heads, full S
        pl.BlockSpec((1, H, S, Dh), lambda b, t: (b, 0, 0, 0)),   # V heads, full S
        pl.BlockSpec((tq, S), lambda b, t: (t, 0)),               # mask rows
        wspec((H, Dh, E)),        # wout (per-head rows)
        wspec((1, E)),            # bout
        wspec((E, PF)),           # linear1 weight (transposed)
        wspec((1, PF)),           # linear1 bias
        wspec((PF, E)),           # linear2 weight (transposed)
        wspec((1, E)),            # linear2 bias
        pl.BlockSpec(memory_space=pltpu.MemorySpace.SMEM),        # resweight
    ]
    out_spec = pl.BlockSpec((1, tq, E), lambda b, t: (b, t, 0))

    # Advisory cost estimate so XLA can schedule neighbours around this call.
    flops = B * S * (4 * S * E + 2 * E * E + 4 * E * PF)
    transcendentals = B * H * S * (S + 1)              # exp + approx reciprocal
    bytes_accessed = 4 * (5 * B * S * E + S * S + E * E + 2 * E * PF
                          + 3 * E + PF + 1)

    return pl.pallas_call(
        encoder_layer_kernel,
        out_shape=jax.ShapeDtypeStruct((B, S, E), jnp.float32),
        grid_spec=pltpu.PrefetchScalarGridSpec(
            num_scalar_prefetch=0,
            grid=(B, nq),
            in_specs=in_specs,
            out_specs=out_spec,
        ),
        compiler_params=pltpu.CompilerParams(
            dimension_semantics=("parallel", "parallel"),
            vmem_limit_bytes=32 * 1024 * 1024,
        ),
        cost_estimate=pl.CostEstimate(
            flops=flops,
            transcendentals=transcendentals,
            bytes_accessed=bytes_accessed),
    )(x, q_h, k_h, v_h, mask,
      wout_h, params["b_out"], w1_t, params["b1"], w2_t, params["b2"], resw)


def ref_forward(x, mask, p, *, n_heads):
    """Pure-JAX reference mirroring torch.nn.MultiheadAttention + FFN."""
    B, S, E = x.shape
    Dh = E // n_heads
    res = p["resweight"][0, 0]

    qkv = x @ p["w_in_t"] + p["b_in"][0]              # (B, S, 3E)
    q, k, v = jnp.split(qkv, 3, axis=-1)

    def split_heads(t):                               # (B, S, E) -> (B, H, S, Dh)
        return t.reshape(B, S, n_heads, Dh).transpose(0, 2, 1, 3)

    qh, kh, vh = split_heads(q), split_heads(k), split_heads(v)
    scores = jnp.einsum("bhqd,bhkd->bhqk", qh, kh) / (Dh ** 0.5) + mask
    probs = jax.nn.softmax(scores, axis=-1)
    ctx = jnp.einsum("bhqk,bhkd->bhqd", probs, vh)
    ctx = ctx.transpose(0, 2, 1, 3).reshape(B, S, E)
    attn = ctx @ p["w_out_t"] + p["b_out"][0]

    src = x + res * attn
    h = jax.nn.relu(src @ p["w1_t"] + p["b1"][0])
    ffn = h @ p["w2_t"] + p["b2"][0]
    return src + res * ffn


if __name__ == "__main__":
    B, S, E, H, PF = 2, 8, 32, 4, 64
    key = jax.random.PRNGKey(0)
    ks = jax.random.split(key, 12)

    # Deterministic synthetic parameters (shapes match the PyTorch module).
    scale = 0.1
    params = {
        # MultiheadAttention: in_proj_weight (3E, E) -> stored transposed (E, 3E)
        "w_in_t":  scale * jax.random.normal(ks[0], (E, 3 * E), jnp.float32),
        "b_in":    scale * jax.random.normal(ks[1], (1, 3 * E), jnp.float32),
        # out_proj: (E, E) -> transposed
        "w_out_t": scale * jax.random.normal(ks[2], (E, E), jnp.float32),
        "b_out":   scale * jax.random.normal(ks[3], (1, E), jnp.float32),
        # linear1: (PF, E) -> transposed (E, PF)
        "w1_t":    scale * jax.random.normal(ks[4], (E, PF), jnp.float32),
        "b1":      scale * jax.random.normal(ks[5], (1, PF), jnp.float32),
        # linear2: (E, PF) -> transposed (PF, E)
        "w2_t":    scale * jax.random.normal(ks[6], (PF, E), jnp.float32),
        "b2":      scale * jax.random.normal(ks[7], (1, E), jnp.float32),
        # resweight (Parameter([init_resweight])); nonzero so compute is exercised
        "resweight": jnp.full((1, 1), 0.5, jnp.float32),
    }

    x = jax.random.normal(ks[8], (B, S, E), jnp.float32)
    # Additive float attention mask (S, S); small random values.
    mask = 0.1 * jax.random.normal(ks[9], (S, S), jnp.float32)

    out = encoder_layer(x, mask, params, n_heads=H)
    out = jax.block_until_ready(out)

    ref = ref_forward(x, mask, params, n_heads=H)
    assert out.shape == (B, S, E)
    # Tolerance loosened slightly because the softmax denominator uses the
    # EUP approximate reciprocal (pl.reciprocal(approx=True)).
    assert jnp.allclose(out, ref, atol=2e-3, rtol=2e-3), "mismatch vs JAX reference"
    print("KERNEL_OK")
</pallas_src>

<mosaic_0001>
module attributes {stable_mosaic.version = 11 : i64} {
  func.func @encoder_layer_kernel(%arg0: i32, %arg1: i32, %arg2: memref<1x8x32xf32, #tpu.memory_space<vmem>>, %arg3: memref<1x4x8x8xf32, #tpu.memory_space<vmem>>, %arg4: memref<1x4x8x8xf32, #tpu.memory_space<vmem>>, %arg5: memref<1x4x8x8xf32, #tpu.memory_space<vmem>>, %arg6: memref<8x8xf32, #tpu.memory_space<vmem>>, %arg7: memref<4x8x32xf32, #tpu.memory_space<vmem>>, %arg8: memref<1x32xf32, #tpu.memory_space<vmem>>, %arg9: memref<32x64xf32, #tpu.memory_space<vmem>>, %arg10: memref<1x64xf32, #tpu.memory_space<vmem>>, %arg11: memref<64x32xf32, #tpu.memory_space<vmem>>, %arg12: memref<1x32xf32, #tpu.memory_space<vmem>>, %arg13: memref<1x1xf32, #tpu.memory_space<smem>>, %arg14: memref<1x8x32xf32, #tpu.memory_space<vmem>>) attributes {dimension_semantics = [#tpu.dimension_semantics<parallel>, #tpu.dimension_semantics<parallel>], iteration_bounds = array<i64: 2, 1>, scalar_prefetch = 0 : i64, scratch_operands = 0 : i64, tpu.core_type = #tpu.core_type<tc>, window_params = [{transform_indices = @transform_0, window_bounds = array<i64: 1, 8, 32>}, {transform_indices = @transform_1, window_bounds = array<i64: 1, 4, 8, 8>}, {transform_indices = @transform_2, window_bounds = array<i64: 1, 4, 8, 8>}, {transform_indices = @transform_3, window_bounds = array<i64: 1, 4, 8, 8>}, {transform_indices = @transform_4, window_bounds = array<i64: 8, 8>}, {pipeline_mode = #tpu.pipeline_mode<synchronous>, transform_indices = @transform_5, window_bounds = array<i64: 4, 8, 32>}, {pipeline_mode = #tpu.pipeline_mode<synchronous>, transform_indices = @transform_6, window_bounds = array<i64: 1, 32>}, {pipeline_mode = #tpu.pipeline_mode<synchronous>, transform_indices = @transform_7, window_bounds = array<i64: 32, 64>}, {pipeline_mode = #tpu.pipeline_mode<synchronous>, transform_indices = @transform_8, window_bounds = array<i64: 1, 64>}, {pipeline_mode = #tpu.pipeline_mode<synchronous>, transform_indices = @transform_9, window_bounds = array<i64: 64, 32>}, {pipeline_mode = #tpu.pipeline_mode<synchronous>, transform_indices = @transform_10, window_bounds = array<i64: 1, 32>}, {transform_indices = @transform_11, window_bounds = array<i64: 1, 1>}, {transform_indices = @transform_12, window_bounds = array<i64: 1, 8, 32>}]} {
    %c0 = arith.constant 0 : index
    %c0_0 = arith.constant 0 : index
    %c0_1 = arith.constant 0 : index
    %0 = vector.load %arg2[%c0, %c0_0, %c0_1] : memref<1x8x32xf32, #tpu.memory_space<vmem>>, vector<1x8x32xf32>
    %1 = vector.shape_cast %0 : vector<1x8x32xf32> to vector<8x32xf32>
    %c0_2 = arith.constant 0 : index
    %c0_3 = arith.constant 0 : index
    %c0_4 = arith.constant 0 : index
    %c0_5 = arith.constant 0 : index
    %2 = vector.load %arg3[%c0_2, %c0_3, %c0_4, %c0_5] : memref<1x4x8x8xf32, #tpu.memory_space<vmem>>, vector<1x4x8x8xf32>
    %3 = vector.shape_cast %2 : vector<1x4x8x8xf32> to vector<4x8x8xf32>
    %c0_6 = arith.constant 0 : index
    %c0_7 = arith.constant 0 : index
    %c0_8 = arith.constant 0 : index
    %c0_9 = arith.constant 0 : index
    %4 = vector.load %arg4[%c0_6, %c0_7, %c0_8, %c0_9] : memref<1x4x8x8xf32, #tpu.memory_space<vmem>>, vector<1x4x8x8xf32>
    %5 = vector.shape_cast %4 : vector<1x4x8x8xf32> to vector<4x8x8xf32>
    %c0_10 = arith.constant 0 : index
    %c0_11 = arith.constant 0 : index
    %c0_12 = arith.constant 0 : index
    %c0_13 = arith.constant 0 : index
    %6 = vector.load %arg5[%c0_10, %c0_11, %c0_12, %c0_13] : memref<1x4x8x8xf32, #tpu.memory_space<vmem>>, vector<1x4x8x8xf32>
    %7 = vector.shape_cast %6 : vector<1x4x8x8xf32> to vector<4x8x8xf32>
    %c0_14 = arith.constant 0 : index
    %c0_15 = arith.constant 0 : index
    %8 = vector.load %arg6[%c0_14, %c0_15] : memref<8x8xf32, #tpu.memory_space<vmem>>, vector<8x8xf32>
    %c0_16 = arith.constant 0 : index
    %c0_17 = arith.constant 0 : index
    %9 = memref.load %arg13[%c0_16, %c0_17] : memref<1x1xf32, #tpu.memory_space<smem>>
    "tpu.trace_start"() <{level = 10 : i32, message = "hqd,hkd->hqk"}> : () -> ()
    %cst = arith.constant dense<0.000000e+00> : vector<4x8x8xf32>
    %10 = tpu.matmul %3, %5, %cst {dimension_numbers = #tpu.dot_dimension_numbers<[2], [2], [1], [1], [0, 0, 0, 1, 1, 1], [0], [0]>} : vector<4x8x8xf32>, vector<4x8x8xf32>, vector<4x8x8xf32> -> vector<4x8x8xf32>
    "tpu.trace_stop"() : () -> ()
    %11 = vector.shape_cast %8 : vector<8x8xf32> to vector<1x8x8xf32>
    %12 = vector.broadcast %11 : vector<1x8x8xf32> to vector<4x8x8xf32>
    %13 = arith.addf %10, %12 : vector<4x8x8xf32>
    %cst_18 = arith.constant dense<0xFF800000> : vector<4x8xf32>
    %14 = vector.multi_reduction <maximumf>, %13, %cst_18 [2] : vector<4x8x8xf32> to vector<4x8xf32>
    %15 = vector.shape_cast %14 : vector<4x8xf32> to vector<4x8x1xf32>
    %16 = vector.broadcast %15 : vector<4x8x1xf32> to vector<4x8x8xf32>
    %17 = arith.subf %13, %16 : vector<4x8x8xf32>
    %18 = math.exp %17 : vector<4x8x8xf32>
    %cst_19 = arith.constant dense<0.000000e+00> : vector<4x8xf32>
    %19 = vector.multi_reduction <add>, %18, %cst_19 [2] : vector<4x8x8xf32> to vector<4x8xf32>
    %20 = vector.shape_cast %19 : vector<4x8xf32> to vector<4x8x1xf32>
    %21 = tpu.reciprocal %20 {approx = true} : vector<4x8x1xf32> -> vector<4x8x1xf32>
    %22 = vector.broadcast %21 : vector<4x8x1xf32> to vector<4x8x8xf32>
    %23 = arith.mulf %18, %22 : vector<4x8x8xf32>
    "tpu.trace_start"() <{level = 10 : i32, message = "hqk,hkd->hqd"}> : () -> ()
    %cst_20 = arith.constant dense<0.000000e+00> : vector<4x8x8xf32>
    %24 = tpu.matmul %23, %7, %cst_20 {dimension_numbers = #tpu.dot_dimension_numbers<[2], [1], [1], [2], [0, 0, 0, 1, 1, 2], [0], [0]>} : vector<4x8x8xf32>, vector<4x8x8xf32>, vector<4x8x8xf32> -> vector<4x8x8xf32>
    "tpu.trace_stop"() : () -> ()
    %c0_21 = arith.constant 0 : index
    %c0_22 = arith.constant 0 : index
    %c0_23 = arith.constant 0 : index
    %25 = vector.load %arg7[%c0_21, %c0_22, %c0_23] : memref<4x8x32xf32, #tpu.memory_space<vmem>>, vector<4x8x32xf32>
    %26 = vector.extract_strided_slice %24 {offsets = [0, 0, 0], sizes = [1, 8, 8], strides = [1, 1, 1]} : vector<4x8x8xf32> to vector<1x8x8xf32>
    %27 = vector.shape_cast %26 : vector<1x8x8xf32> to vector<8x8xf32>
    %28 = vector.extract_strided_slice %25 {offsets = [0, 0, 0], sizes = [1, 8, 32], strides = [1, 1, 1]} : vector<4x8x32xf32> to vector<1x8x32xf32>
    %29 = vector.shape_cast %28 : vector<1x8x32xf32> to vector<8x32xf32>
    %cst_24 = arith.constant dense<0.000000e+00> : vector<8x32xf32>
    %30 = tpu.matmul %27, %29, %cst_24 {dimension_numbers = #tpu.dot_dimension_numbers<[1], [0], [0], [1], [0, 0, 1, 1], [], []>} : vector<8x8xf32>, vector<8x32xf32>, vector<8x32xf32> -> vector<8x32xf32>
    %31 = vector.extract_strided_slice %24 {offsets = [1, 0, 0], sizes = [1, 8, 8], strides = [1, 1, 1]} : vector<4x8x8xf32> to vector<1x8x8xf32>
    %32 = vector.shape_cast %31 : vector<1x8x8xf32> to vector<8x8xf32>
    %33 = vector.extract_strided_slice %25 {offsets = [1, 0, 0], sizes = [1, 8, 32], strides = [1, 1, 1]} : vector<4x8x32xf32> to vector<1x8x32xf32>
    %34 = vector.shape_cast %33 : vector<1x8x32xf32> to vector<8x32xf32>
    %cst_25 = arith.constant dense<0.000000e+00> : vector<8x32xf32>
    %35 = tpu.matmul %32, %34, %cst_25 {dimension_numbers = #tpu.dot_dimension_numbers<[1], [0], [0], [1], [0, 0, 1, 1], [], []>} : vector<8x8xf32>, vector<8x32xf32>, vector<8x32xf32> -> vector<8x32xf32>
    %36 = arith.addf %30, %35 : vector<8x32xf32>
    %37 = vector.extract_strided_slice %24 {offsets = [2, 0, 0], sizes = [1, 8, 8], strides = [1, 1, 1]} : vector<4x8x8xf32> to vector<1x8x8xf32>
    %38 = vector.shape_cast %37 : vector<1x8x8xf32> to vector<8x8xf32>
    %39 = vector.extract_strided_slice %25 {offsets = [2, 0, 0], sizes = [1, 8, 32], strides = [1, 1, 1]} : vector<4x8x32xf32> to vector<1x8x32xf32>
    %40 = vector.shape_cast %39 : vector<1x8x32xf32> to vector<8x32xf32>
    %cst_26 = arith.constant dense<0.000000e+00> : vector<8x32xf32>
    %41 = tpu.matmul %38, %40, %cst_26 {dimension_numbers = #tpu.dot_dimension_numbers<[1], [0], [0], [1], [0, 0, 1, 1], [], []>} : vector<8x8xf32>, vector<8x32xf32>, vector<8x32xf32> -> vector<8x32xf32>
    %42 = arith.addf %36, %41 : vector<8x32xf32>
    %43 = vector.extract_strided_slice %24 {offsets = [3, 0, 0], sizes = [1, 8, 8], strides = [1, 1, 1]} : vector<4x8x8xf32> to vector<1x8x8xf32>
    %44 = vector.shape_cast %43 : vector<1x8x8xf32> to vector<8x8xf32>
    %45 = vector.extract_strided_slice %25 {offsets = [3, 0, 0], sizes = [1, 8, 32], strides = [1, 1, 1]} : vector<4x8x32xf32> to vector<1x8x32xf32>
    %46 = vector.shape_cast %45 : vector<1x8x32xf32> to vector<8x32xf32>
    %cst_27 = arith.constant dense<0.000000e+00> : vector<8x32xf32>
    %47 = tpu.matmul %44, %46, %cst_27 {dimension_numbers = #tpu.dot_dimension_numbers<[1], [0], [0], [1], [0, 0, 1, 1], [], []>} : vector<8x8xf32>, vector<8x32xf32>, vector<8x32xf32> -> vector<8x32xf32>
    %48 = arith.addf %42, %47 : vector<8x32xf32>
    %c0_28 = arith.constant 0 : index
    %c0_29 = arith.constant 0 : index
    %49 = vector.load %arg8[%c0_28, %c0_29] : memref<1x32xf32, #tpu.memory_space<vmem>>, vector<1x32xf32>
    %50 = vector.broadcast %49 : vector<1x32xf32> to vector<8x32xf32>
    %51 = arith.addf %48, %50 : vector<8x32xf32>
    %52 = vector.broadcast %9 : f32 to vector<8x32xf32>
    %53 = arith.mulf %52, %51 : vector<8x32xf32>
    %54 = arith.addf %1, %53 : vector<8x32xf32>
    %c0_30 = arith.constant 0 : index
    %c0_31 = arith.constant 0 : index
    %55 = vector.load %arg9[%c0_30, %c0_31] : memref<32x64xf32, #tpu.memory_space<vmem>>, vector<32x64xf32>
    %c0_32 = arith.constant 0 : index
    %c0_33 = arith.constant 0 : index
    %56 = vector.load %arg11[%c0_32, %c0_33] : memref<64x32xf32, #tpu.memory_space<vmem>>, vector<64x32xf32>
    %cst_34 = arith.constant dense<0.000000e+00> : vector<8x64xf32>
    %57 = tpu.matmul %54, %55, %cst_34 {dimension_numbers = #tpu.dot_dimension_numbers<[1], [0], [0], [1], [0, 0, 1, 1], [], []>} : vector<8x32xf32>, vector<32x64xf32>, vector<8x64xf32> -> vector<8x64xf32>
    %c0_35 = arith.constant 0 : index
    %c0_36 = arith.constant 0 : index
    %58 = vector.load %arg10[%c0_35, %c0_36] : memref<1x64xf32, #tpu.memory_space<vmem>>, vector<1x64xf32>
    %59 = vector.broadcast %58 : vector<1x64xf32> to vector<8x64xf32>
    %60 = arith.addf %57, %59 : vector<8x64xf32>
    %cst_37 = arith.constant 0.000000e+00 : f32
    %61 = vector.broadcast %cst_37 : f32 to vector<8x64xf32>
    %62 = arith.maximumf %60, %61 : vector<8x64xf32>
    %cst_38 = arith.constant dense<0.000000e+00> : vector<8x32xf32>
    %63 = tpu.matmul %62, %56, %cst_38 {dimension_numbers = #tpu.dot_dimension_numbers<[1], [0], [0], [1], [0, 0, 1, 1], [], []>} : vector<8x64xf32>, vector<64x32xf32>, vector<8x32xf32> -> vector<8x32xf32>
    %c0_39 = arith.constant 0 : index
    %c0_40 = arith.constant 0 : index
    %64 = vector.load %arg12[%c0_39, %c0_40] : memref<1x32xf32, #tpu.memory_space<vmem>>, vector<1x32xf32>
    %65 = vector.broadcast %64 : vector<1x32xf32> to vector<8x32xf32>
    %66 = arith.addf %63, %65 : vector<8x32xf32>
    %67 = vector.broadcast %9 : f32 to vector<8x32xf32>
    %68 = arith.mulf %67, %66 : vector<8x32xf32>
    %69 = arith.addf %54, %68 : vector<8x32xf32>
    %c0_41 = arith.constant 0 : index
    %c0_42 = arith.constant 0 : index
    %c0_43 = arith.constant 0 : index
    %70 = vector.load %arg14[%c0_41, %c0_42, %c0_43] : memref<1x8x32xf32, #tpu.memory_space<vmem>>, vector<1x8x32xf32>
    %71 = vector.shape_cast %70 : vector<1x8x32xf32> to vector<8x32xf32>
    %72 = vector.shape_cast %69 : vector<8x32xf32> to vector<1x8x32xf32>
    tpu.vector_store %arg14[%c0_41, %c0_42, %c0_43], %72 {strides = array<i32>} : memref<1x8x32xf32, #tpu.memory_space<vmem>>, vector<1x8x32xf32>,
    return
  }
  func.func @transform_0(%arg0: i32, %arg1: i32) -> (i32, i32, i32) {
    %c0_i32 = arith.constant 0 : i32
    %c0_i32_0 = arith.constant 0 : i32
    return %arg0, %arg1, %c0_i32 : i32, i32, i32
  }
  func.func @transform_1(%arg0: i32, %arg1: i32) -> (i32, i32, i32, i32) {
    %c0_i32 = arith.constant 0 : i32
    %c0_i32_0 = arith.constant 0 : i32
    %c0_i32_1 = arith.constant 0 : i32
    return %arg0, %c0_i32, %arg1, %c0_i32_0 : i32, i32, i32, i32
  }
  func.func @transform_2(%arg0: i32, %arg1: i32) -> (i32, i32, i32, i32) {
    %c0_i32 = arith.constant 0 : i32
    %c0_i32_0 = arith.constant 0 : i32
    %c0_i32_1 = arith.constant 0 : i32
    %c0_i32_2 = arith.constant 0 : i32
    return %arg0, %c0_i32, %c0_i32_0, %c0_i32_1 : i32, i32, i32, i32
  }
  func.func @transform_3(%arg0: i32, %arg1: i32) -> (i32, i32, i32, i32) {
    %c0_i32 = arith.constant 0 : i32
    %c0_i32_0 = arith.constant 0 : i32
    %c0_i32_1 = arith.constant 0 : i32
    %c0_i32_2 = arith.constant 0 : i32
    return %arg0, %c0_i32, %c0_i32_0, %c0_i32_1 : i32, i32, i32, i32
  }
  func.func @transform_4(%arg0: i32, %arg1: i32) -> (i32, i32) {
    %c0_i32 = arith.constant 0 : i32
    %c0_i32_0 = arith.constant 0 : i32
    return %arg1, %c0_i32 : i32, i32
  }
  func.func @transform_5(%arg0: i32, %arg1: i32) -> (i32, i32, i32) {
    %c0_i32 = arith.constant 0 : i32
    %c0_i32_0 = arith.constant 0 : i32
    %c0_i32_1 = arith.constant 0 : i32
    %c0_i32_2 = arith.constant 0 : i32
    return %c0_i32, %c0_i32_0, %c0_i32_1 : i32, i32, i32
  }
  func.func @transform_6(%arg0: i32, %arg1: i32) -> (i32, i32) {
    %c0_i32 = arith.constant 0 : i32
    %c0_i32_0 = arith.constant 0 : i32
    %c0_i32_1 = arith.constant 0 : i32
    return %c0_i32, %c0_i32_0 : i32, i32
  }
  func.func @transform_7(%arg0: i32, %arg1: i32) -> (i32, i32) {
    %c0_i32 = arith.constant 0 : i32
    %c0_i32_0 = arith.constant 0 : i32
    %c0_i32_1 = arith.constant 0 : i32
    return %c0_i32, %c0_i32_0 : i32, i32
  }
  func.func @transform_8(%arg0: i32, %arg1: i32) -> (i32, i32) {
    %c0_i32 = arith.constant 0 : i32
    %c0_i32_0 = arith.constant 0 : i32
    %c0_i32_1 = arith.constant 0 : i32
    return %c0_i32, %c0_i32_0 : i32, i32
  }
  func.func @transform_9(%arg0: i32, %arg1: i32) -> (i32, i32) {
    %c0_i32 = arith.constant 0 : i32
    %c0_i32_0 = arith.constant 0 : i32
    %c0_i32_1 = arith.constant 0 : i32
    return %c0_i32, %c0_i32_0 : i32, i32
  }
  func.func @transform_10(%arg0: i32, %arg1: i32) -> (i32, i32) {
    %c0_i32 = arith.constant 0 : i32
    %c0_i32_0 = arith.constant 0 : i32
    %c0_i32_1 = arith.constant 0 : i32
    return %c0_i32, %c0_i32_0 : i32, i32
  }
  func.func @transform_11(%arg0: i32, %arg1: i32) -> (i32, i32) {
    %c0_i32 = arith.constant 0 : i32
    %c0_i32_0 = arith.constant 0 : i32
    %c0_i32_1 = arith.constant 0 : i32
    return %c0_i32, %c0_i32_0 : i32, i32
  }
  func.func @transform_12(%arg0: i32, %arg1: i32) -> (i32, i32, i32) {
    %c0_i32 = arith.constant 0 : i32
    %c0_i32_0 = arith.constant 0 : i32
    return %arg0, %arg1, %c0_i32 : i32, i32, i32
  }
}

</mosaic_0001>

<bundles_post_ra>
// kernel: tpu_custom_call.1
= control target key start
LH: loop header
LB: loop body
LE: loop exit
PB: predicated region body
PF: predicated region fallthrough
CT: control target
= control target key end

     0   :  { %s3003_s0 = inlined_call_operand.hbm [shape: f32[2,8,32], index: 0, kind: input, shape index: {}]   ;;  %s3004_s1 = inlined_call_operand.vmem [shape: f32[2,4,8,8], index: 1, kind: input, shape index: {}]   ;;  %s3005_s2 = inlined_call_operand.hbm [shape: f32[2,4,8,8], index: 2, kind: input, shape index: {}]   ;;  %s3006_s3 = inlined_call_operand.hbm [shape: f32[2,4,8,8], index: 3, kind: input, shape index: {}]   ;;  %s3007_s4 = inlined_call_operand.hbm [shape: f32[8,8], index: 4, kind: input, shape index: {}]   ;;  %s3008_s5 = inlined_call_operand.vmem [shape: f32[4,8,32], index: 5, kind: input, shape index: {}]   ;;  %s3009_s6 = inlined_call_operand.vmem [shape: f32[1,32], index: 6, kind: input, shape index: {}]   ;;  %s3010_s7 = inlined_call_operand.hbm [shape: f32[32,64], index: 7, kind: input, shape index: {}]   ;;  %s3011_s8 = inlined_call_operand.vmem [shape: f32[1,64], index: 8, kind: input, shape index: {}]   ;;  %s3012_s9 = inlined_call_operand.vmem [shape: f32[64,32], index: 9, kind: input, shape index: {}]   ;;  %s3013_s10 = inlined_call_operand.vmem [shape: f32[1,32], index: 10, kind: input, shape index: {}]   ;;  %s3014_s11 = inlined_call_operand.<no memory space> [shape: f32[1,1], index: 11, kind: input, shape index: {}]   ;;  %s3015_s12 = inlined_call_operand.hbm [shape: f32[2,8,32], index: 12, kind: output, shape index: {}]  }
   0x1   :  { %3041 = sst [smem:[#allocation25_spill]] %s3004_s1 }
   0x2   :  { %3042 = sst [smem:[#allocation26_spill]] %s3005_s2 }
   0x3   :  { %3043 = sst [smem:[#allocation27_spill]] %s3007_s4 }
   0x4   :  { %3044 = sst [smem:[#allocation28_spill]] %s3008_s5 }
   0x5   :  { %3045 = sst [smem:[#allocation29_spill]] %s3009_s6 }
   0x6   :  { %3046 = sst [smem:[#allocation30_spill]] %s3011_s8 }
   0x7   :  { %3047 = sst [smem:[#allocation31_spill]] %s3012_s9 }
   0x8   :  { %3048 = sst [smem:[#allocation32_spill]] %s3013_s10 }
   0x9   :  { %3049 = sst [smem:[#allocation33_spill]] %s3015_s12 }
   0xa   :  { %17 = sst [smem:[#allocation2]] %s3014_s11 }
   0xb   :  { %18 = vsyncpa [#allocation4], 0 }
   0xc   :  { %20 = vsyncpa [#allocation4 + $0x1], 0 }
   0xd   :  { %21 = vsyncpa [#allocation7], 0 }
   0xe   :  { %23 = vsyncpa [#allocation7 + $0x1], 0 }
   0xf   :  { %24 = vsyncpa [#allocation10], 0 }
  0x10   :  { %25 = vsyncpa [#allocation5], 0 }
  0x11   :  { %27 = vsyncpa [#allocation5 + $0x1], 0  ;;  %s2537_s23 = smov 0   ;;  %s2539_s24 = smov 0  }
  0x12   :  { %s2541_s25 = smov 0   ;;  %s2543_s26 = smov 0  }
  0x13   :  { %s2545_s27 = smov 0   ;;  %s2547_s28 = smov 0  }
  0x14 LB: > { %3050 = sst [smem:[#allocation17_spill]] %s2436_s23  ;;  %s2568_s11 = sadd.s32 4294967295, %s2456_s28   ;;  %s2456_s28 = sphi %s2547_s28, %s33_s28   ;;  %s2452_s27 = sphi %s2545_s27, %s3104_s27   ;;  %s2448_s26 = sphi %s2543_s26, %s3103_s26   ;;  %s2444_s25 = sphi %s2541_s25, %s3099_s25   ;;  %s2440_s24 = sphi %s2539_s24, %s3102_s24   ;;  %s2436_s23 = sphi %s2537_s23, %s3101_s23  }
  0x15   : > { %3051 = sst [smem:[#allocation18_spill]] %s2444_s25  ;;  %s1910_s29 = sadd.s32 4294967294, %s2456_s28  }
  0x16   : > { %3052 = sst [smem:[#allocation19_spill]] %s2448_s26  ;;  %p61_p0 = scmp.ne.s32.totalorder %s2444_s25, %s2440_s24 }
  0x17   : > { %3053 = sst [smem:[#allocation20_spill]] %s2456_s28  ;;  %p62_p1 = scmp.eq.s32.totalorder %s2456_s28, 0 }
  0x18   : > { %p67_p2 = scmp.ne.s32.totalorder %s2440_s24, %s2436_s23  ;;  %p3021_p3 = scmp.eq.s32.totalorder %s2568_s11, 0 }
  0x19   : > { %p346_p4 = scmp.eq.s32.totalorder %s2568_s11, 1  ;;  %p2579_p5 = por %p62_p1, %p61_p0 }
  0x1a   : > { %p352_p6 = scmp.eq.s32.totalorder %s1910_s29, 1  ;;  %p2585_p7 = por %p3021_p3, %p67_p2 }
  0x1b   : > { %p2589_p8 = por %p346_p4, %p61_p0  ;;  %p1911_p10 = scmp.ge.s32.totalorder %s2456_s28, 1 }
  0x1c   : > { %s3055_s14 = scalar_select %p2585_p7, 1, 0 }
  0x1d   : > { %s3056_s15 = scalar_select %p2589_p8, 1, 0 }
  0x1e   : > { %p2593_p9 = por %p352_p6, %p67_p2  ;;  %p359_p11 = scmp.lt.s32.totalorder %s2456_s28, 3 }
  0x1f   : > { %3057 = sst [smem:[#allocation21_spill]] %s3056_s15  ;;  %s2458_s18 = smov [#allocation9]  }
  0x20   : > { %s3058_s16 = scalar_select %p2593_p9, 1, 0 }
  0x21   : > { %p2600_p13 = pnand %p1911_p10, %p359_p11  ;;  %s374_s19 = sshll.u32 %s2458_s18, 4  ;;  %s375_s19 = int_to_ptr.vmem [resolvable:$true] %s374_s19 }
  0x22   : > { %3059 = sst [smem:[#allocation22_spill]] %s3058_s16  ;;  %p2145_p1 = scmp.lt.s32.totalorder %s2456_s28, 2 }
  0x23   : > { %s3060_s17 = scalar_select %p2600_p13, 1, 0 }
  0x24   : > { %p2122_p0 = pneg %p2600_p13  ;;  %p2609_p4 = pnand %p2145_p1, %p2579_p5 }
  0x25   : > { %s45_s22 = sadd.s32 1, %s2452_s27  ;;  %s3064_s4 = sld [smem:[#allocation27_spill]] }
  0x26   : > { %s3061_s20 = scalar_select %p2609_p4, 1, 0 }
  0x27   : > { %p2615_p2 = pnand %p2122_p0, %p3021_p3  ;;  %p2620_p6 = scmp.ge.s32.totalorder %s45_s22, 2 }
  0x29   : > { %s3062_s21 = scalar_select %p2615_p2, 1, 0 }
  0x2a   : > { %s3063_s29 = scalar_select %p2620_p6, 1, 0 }
  0x2b   : > { %s2220_s13 = scalar_lea.hbm %s3064_s4, 128  ;;  %p3031_p10 = pneg %p2615_p2 }
  0x2c   : > { %p2221_p5 = scmp.ne.s32.totalorder %s3064_s4, %s2220_s13  ;;  %p2227_p0 = scmp.lt.u32.totalorder %s2220_s13, %s3064_s4 }
  0x2e   : > { %p2223_p11 = pnand %p3031_p10, %p2221_p5 }
  0x30   : > { %p2224_p1 = pneg %p2223_p11 }
  0x32   : > { %p2229_p12 = pnand %p2227_p0, %p2224_p1 }
  0x34   : > { %2232 = shalt.err (!%p2229_p12)
}
  0x35   : > { %s2233_s10 = scalar_lea.vmem %s375_s19, 128  ;;  %p2241_p7 = scmp.lt.s32.totalorder %s375_s19, %s375_s19 }
  0x36   : > { %p2234_p3 = scmp.ne.s32.totalorder %s375_s19, %s2233_s10  ;;  %p2242_p13 = scmp.lt.s32.totalorder %s2233_s10, %s2233_s10 }
  0x38   : > { %p2236_p9 = pnand %p2234_p3, %p3031_p10  ;;  %p2243_p4 = por %p2242_p13, %p2241_p7 }
  0x3a   : > { %p2237_p8 = pneg %p2236_p9 }
  0x3c   : > { %p2244_p6 = pnand %p2243_p4, %p2237_p8 }
  0x3e   : > { %2247 = shalt.err (!%p2244_p6)
}
  0x3f   : > { %2125 = dma.hbm_to_vmem [thread:$0]  (!%p2615_p2), %s3064_s4, 128, %s375_s19, [#allocation10]  }
  0x40   : > { %p3065_p3 = scmp.ne.s32.totalorder %s3063_s29, 0  ;;  %s2651_s10 = sand.u32 1, %s2444_s25  }
  0x41   : > { %s446_s15 = sand.u32 1, %s2456_s28   ;;  %s3029_s16 = sshll.u32 %s2651_s10, 5 }
  0x42   : > { %s3106_s22 = smov (%p3065_p3, %s45_s22), 0  ;;  %s3030_s18 = sshll.u32 %s2452_s27, 9 }
  0x43   : > { %3066 = sst [smem:[#allocation23_spill]] %s3106_s22  ;;  %s49_s12 = ssub.s32 %s2452_s27, %s3106_s22 }
  0x44   : > { %p52_p7 = scmp.eq.s32.totalorder %s49_s12, 0  ;;  %s3067_s13 = sadd.s32 1, %s2444_s25 }
  0x45   : > { %s3069_s2 = sld [smem:[#allocation26_spill]]  ;;  %s450_s4 = scalar_lea.vmem [#allocation6], %s3029_s16 }
  0x46   : > { %s2661_s23 = scalar_select %p52_p7, %s2444_s25, %s3067_s13  }
  0x47   : > { %s457_s22 = sshll.u32 %s450_s4, 4  ;;  %s2674_s12 = scalar_lea.sflag [#allocation7], %s446_s15  ;;  %s2672_s22 = int_to_ptr.vmem [resolvable:$true] %s457_s22 }
  0x48   : > { %3068 = sst [smem:[#allocation24_spill]] %s2661_s23  ;;  %p3070_p9 = scmp.ne.s32.totalorder %s3061_s20, 0 }
  0x4a   : > { %p2680_p12 = pneg %p3070_p9 }
  0x4b   : > { %s2668_s29 = scalar_lea.hbm %s3069_s2, %s3030_s18  ;;  %s2253_s16 = scalar_lea.hbm %s3069_s2, 1024 }
  0x4c   : > { %s2248_s28 = scalar_lea.hbm %s2668_s29, 512  ;;  %p2254_p6 = scmp.lt.u32.totalorder %s2668_s29, %s3069_s2 }
  0x4d   : > { %p2249_p8 = scmp.ne.s32.totalorder %s2668_s29, %s2248_s28  ;;  %p2255_p5 = scmp.lt.u32.totalorder %s2253_s16, %s2248_s28 }
  0x4e   : > { %s3071_s13 = scalar_select %p2680_p12, 1, 0 }
  0x4f   : > { %p2251_p13 = pnand %p2680_p12, %p2249_p8  ;;  %p2256_p11 = por %p2255_p5, %p2254_p6 }
  0x50   : > { %p2257_p1 = scmp.lt.u32.totalorder %s2248_s28, %s2668_s29 }
  0x51   : > { %p2252_p4 = pneg %p2251_p13 }
  0x52   : > { %p2258_p0 = por %p2257_p1, %p2256_p11 }
  0x54   : > { %p2259_p3 = pnand %p2258_p0, %p2252_p4 }
  0x56   : > { %2262 = shalt.err (!%p2259_p3)
}
  0x57   : > { %s2263_s15 = scalar_lea.vmem %s2672_s22, 512  ;;  %s2459_s30 = smov [#allocation6]  }
  0x58   : > { %p2264_p7 = scmp.ne.s32.totalorder %s2672_s22, %s2263_s15  ;;  %s2268_s19 = sshll.u32 %s2459_s30, 4  ;;  %s2269_s19 = int_to_ptr.vmem [resolvable:$false] %s2268_s19 }
  0x59   : > { %s2270_s18 = scalar_lea.vmem %s2269_s19, 1024  ;;  %p2271_p10 = scmp.lt.s32.totalorder %s2672_s22, %s2269_s19 }
  0x5a   : > { %p2266_p8 = pnand %p2264_p7, %p2680_p12  ;;  %p2272_p2 = scmp.lt.s32.totalorder %s2270_s18, %s2263_s15 }
  0x5c   : > { %p2267_p13 = pneg %p2266_p8  ;;  %p2273_p6 = por %p2272_p2, %p2271_p10 }
  0x5e   : > { %p2274_p5 = pnand %p2273_p6, %p2267_p13 }
  0x60   : > { %2277 = shalt.err (!%p2274_p5)
}
  0x61   : > { %s2460_s28 = smov 128   ;;  %s2461_s16 = smov 8  }
  0x62   : > { %2135 = dma.hbm_to_vmem [thread:$0]  (!%p3070_p9), %s2668_s29, 512, %s2672_s22, %s2674_s12, %s2460_s28, %s2460_s28, %s2461_s16  }
  0x63   : > { %s3072_s4 = sshll.u32 %s2452_s27, 9  ;;  %s3073_s18 = sshll.u32 %s2651_s10, 5 }
  0x64   : > { %s2712_s19 = scalar_lea.hbm %s3006_s3, %s3072_s4  ;;  %s471_s2 = scalar_lea.vmem [#allocation8], %s3073_s18 }
  0x65   : > { %s478_s23 = sshll.u32 %s471_s2, 4  ;;  %s2462_s25 = smov [#allocation11]   ;;  %s2746_s23 = int_to_ptr.vmem [resolvable:$true] %s478_s23 }
  0x66   : > { %s390_s8 = sshll.u32 %s2462_s25, 4  ;;  %s2278_s5 = scalar_lea.hbm %s3010_s7, 512  ;;  %s391_s8 = int_to_ptr.vmem [resolvable:$true] %s390_s8 }
  0x67   : > { %p2279_p2 = scmp.ne.s32.totalorder %s3010_s7, %s2278_s5  ;;  %p3074_p10 = scmp.ne.s32.totalorder %s3062_s21, 0 }
  0x68   : > { %p2285_p0 = scmp.lt.u32.totalorder %s2278_s5, %s3010_s7 }
  0x69   : > { %p3075_p4 = pneg %p3074_p10 }
  0x6b   : > { %p2281_p11 = pnand %p2279_p2, %p3075_p4 }
  0x6d   : > { %p2282_p1 = pneg %p2281_p11 }
  0x6f   : > { %p2287_p3 = pnand %p2285_p0, %p2282_p1 }
  0x71   : > { %2290 = shalt.err (!%p2287_p3)
}
  0x72   : > { %s2291_s2 = scalar_lea.vmem %s391_s8, 512  ;;  %p3076_p8 = pmov %p3075_p4 }
  0x73   : > { %p2292_p7 = scmp.ne.s32.totalorder %s391_s8, %s2291_s2  ;;  %p2299_p5 = scmp.lt.s32.totalorder %s391_s8, %s391_s8 }
  0x74   : > { %p2300_p9 = scmp.lt.s32.totalorder %s2291_s2, %s2291_s2 }
  0x75   : > { %p2294_p13 = pnand %p2292_p7, %p3076_p8 }
  0x76   : > { %p2301_p12 = por %p2300_p9, %p2299_p5 }
  0x77   : > { %p2295_p6 = pneg %p2294_p13 }
  0x79   : > { %p2302_p2 = pnand %p2301_p12, %p2295_p6 }
  0x7b   : > { %2305 = shalt.err (!%p2302_p2)
}
  0x7c   : > { %2128 = dma.hbm_to_vmem [thread:$0]  (!%p3074_p10), %s3010_s7, 512, %s391_s8, [#allocation10], %s2460_s28, %s2460_s28, %s2461_s16  }
  0x7d   : > { %s1915_s6 = sshll.u32 %s2651_s10, 3  ;;  %s1916_s9 = sshll.u32 %s2452_s27, 7 }
  0x7e   : > { %s2744_s4 = scalar_lea.hbm %s3003_s0, %s1916_s9  ;;  %s420_s21 = scalar_lea.vmem [#allocation3], %s1915_s6 }
  0x7f   : > { %s428_s30 = sshll.u32 %s420_s21, 4  ;;  %s417_s15 = scalar_lea.sflag [#allocation4], %s2651_s10  ;;  %s429_s30 = int_to_ptr.vmem [resolvable:$true] %s428_s30 }
  0x80   : > { %s2306_s18 = scalar_lea.hbm %s2744_s4, 128  ;;  %p3077_p12 = scmp.ne.s32.totalorder %s3071_s13, 0 }
  0x81   : > { %p2307_p9 = scmp.ne.s32.totalorder %s2744_s4, %s2306_s18  ;;  %s2311_s29 = scalar_lea.hbm %s3003_s0, 256 }
  0x82   : > { %p2312_p11 = scmp.lt.u32.totalorder %s2744_s4, %s3003_s0  ;;  %p2313_p1 = scmp.lt.u32.totalorder %s2311_s29, %s2306_s18 }
  0x83   : > { %p2309_p10 = pnand %p2307_p9, %p3077_p12  ;;  %p2315_p3 = scmp.lt.u32.totalorder %s2306_s18, %s2744_s4 }
  0x84   : > { %p2314_p0 = por %p2313_p1, %p2312_p11 }
  0x85   : > { %p2310_p4 = pneg %p2309_p10 }
  0x86   : > { %p2316_p7 = por %p2315_p3, %p2314_p0 }
  0x88   : > { %p2317_p8 = pnand %p2316_p7, %p2310_p4 }
  0x8a   : > { %2320 = shalt.err (!%p2317_p8)
}
  0x8b   : > { %s2321_s10 = scalar_lea.vmem %s429_s30, 128  ;;  %s2463_s5 = smov [#allocation3]  }
  0x8c   : > { %p2322_p13 = scmp.ne.s32.totalorder %s429_s30, %s2321_s10  ;;  %s2326_s6 = sshll.u32 %s2463_s5, 4  ;;  %s2327_s6 = int_to_ptr.vmem [resolvable:$false] %s2326_s6 }
  0x8d   : > { %s2328_s9 = scalar_lea.vmem %s2327_s6, 256  ;;  %p2329_p2 = scmp.lt.s32.totalorder %s429_s30, %s2327_s6 }
  0x8e   : > { %p2324_p6 = pnand %p2322_p13, %p3077_p12  ;;  %p2330_p9 = scmp.lt.s32.totalorder %s2328_s9, %s2321_s10 }
  0x90   : > { %p2325_p5 = pneg %p2324_p6  ;;  %p2331_p10 = por %p2330_p9, %p2329_p2 }
  0x92   : > { %p2332_p1 = pnand %p2331_p10, %p2325_p5 }
  0x94   : > { %2335 = shalt.err (!%p2332_p1)
}
  0x95   : > { %p3078_p11 = scmp.ne.s32.totalorder %s3061_s20, 0  ;;  %s2336_s25 = scalar_lea.hbm %s2712_s19, 512 }
  0x96   : > { %p2337_p4 = scmp.ne.s32.totalorder %s2712_s19, %s2336_s25  ;;  %s2341_s18 = scalar_lea.hbm %s3006_s3, 1024 }
  0x97   : > { %2132 = dma.hbm_to_vmem [thread:$0]  (!%p3078_p11), %s2744_s4, 128, %s429_s30, %s417_s15  }
  0x98   : > { %p2339_p0 = pnand %p2337_p4, %p3077_p12  ;;  %p2342_p7 = scmp.lt.u32.totalorder %s2712_s19, %s3006_s3 }
  0x99   : > { %p2343_p8 = scmp.lt.u32.totalorder %s2341_s18, %s2336_s25  ;;  %p2345_p6 = scmp.lt.u32.totalorder %s2336_s25, %s2712_s19 }
  0x9a   : > { %p2340_p3 = pneg %p2339_p0 }
  0x9b   : > { %p2344_p13 = por %p2343_p8, %p2342_p7 }
  0x9d   : > { %p2346_p5 = por %p2345_p6, %p2344_p13 }
  0x9f   : > { %p2347_p2 = pnand %p2346_p5, %p2340_p3 }
  0xa1   : > { %2350 = shalt.err (!%p2347_p2)
}
  0xa2   : > { %s2351_s4 = scalar_lea.vmem %s2746_s23, 512  ;;  %s2464_s30 = smov [#allocation8]  }
  0xa3   : > { %p2352_p9 = scmp.ne.s32.totalorder %s2746_s23, %s2351_s4  ;;  %s2356_s15 = sshll.u32 %s2464_s30, 4  ;;  %s2357_s15 = int_to_ptr.vmem [resolvable:$false] %s2356_s15 }
  0xa4   : > { %s2358_s29 = scalar_lea.vmem %s2357_s15, 1024  ;;  %p2359_p4 = scmp.lt.s32.totalorder %s2746_s23, %s2357_s15 }
  0xa5   : > { %p2354_p10 = pnand %p2352_p9, %p3077_p12  ;;  %p2360_p0 = scmp.lt.s32.totalorder %s2358_s29, %s2351_s4 }
  0xa7   : > { %p2355_p1 = pneg %p2354_p10  ;;  %p2361_p7 = por %p2360_p0, %p2359_p4 }
  0xa9   : > { %p2362_p8 = pnand %p2361_p7, %p2355_p1 }
  0xab   : > { %2365 = shalt.err (!%p2362_p8)
}
  0xac   : > { %2138 = dma.hbm_to_vmem [thread:$0]  (!%p3078_p11), %s2712_s19, 512, %s2746_s23, %s2674_s12, %s2460_s28, %s2460_s28, %s2461_s16  }
  0xad   : > { %p3079_p12 = scmp.ne.s32.totalorder %s3060_s17, 0 }
  0xae   : > { %s2794_s13 = sand.u32 (!%p3079_p12), 1, %s2440_s24   ;;  %p3080_p3 = scmp.ne.s32.totalorder (!%p3079_p12), %s3055_s14, 0 }
  0xaf   : > { %490 = sbr.rel (%p3079_p12) target bundleno = 1622 (0x656), region = 68  ;;  %s1924_s2 = sshll.u32 (!%p3079_p12), %s2794_s13, 3 }
  0xb0   : > { %s493_s1 = scalar_lea.sflag (!%p3079_p12), [#allocation4], %s2794_s13  ;;  %s2800_s20 = scalar_lea.vmem (!%p3079_p12), [#allocation3], %s1924_s2 }
  0xb6   : > { %2419 = dma.done.wait (%p3080_p3), %s493_s1, 128  }
  0xb7   : > { %2421 = vsyncadd (%p3080_p3), %s493_s1, 4294967168  ;;  %s501_s17 = sand.u32 1, %s2568_s11   ;;  %s1925_s23 = sshll.u32 %s2794_s13, 5 }
  0xb8   : > { %s502_s12 = scalar_lea.sflag [#allocation7], %s501_s17  ;;  %s2808_s28 = scalar_lea.vmem [#allocation6], %s1925_s23 }
  0xb9   : > { %2423 = dma.done.wait (%p3080_p3), %s502_s12, 1024  }
  0xba   : > { %2425 = vsyncadd (%p3080_p3), %s502_s12, 4294966272  ;;  %s2814_s16 = scalar_lea.vmem [#allocation8], %s1925_s23  ;;  %p3081_p11 = scmp.eq.s32.totalorder %s2568_s11, 0 }
  0xbc   : > { %2427 = dma.done.wait (%p3081_p11), [#allocation10], 640   ;;  %p3082_p13 = pmov %p3081_p11 }
  0xbd   : > { %s3083_s19 = sld [smem:[#allocation19_spill]]  ;;  %v2465_v0 = vmov 0.0   ;;  %vm2466_vm0 = vmmov 0   ;;  %vm604_vm1 = vcmask 64512   ;;  %s3084_s6 = sld [smem:[#allocation25_spill]]  ;;  %v594_v1 = vld [vmem:[%s2808_s28] sm:$0xff] }
  0xbe   : > { %2429 = vsyncadd (%p3082_p13), [#allocation10], 4294966656  ;;  %1998 = vmatprep.subr.mxu0 %v2465_v0  ;;  %2000 = vmatprep.mubr.msk.f32.mxu0 %vm2466_vm0, %v2465_v0  ;;  %v595_v3 = vld [vmem:[%s2808_s28 + $0x8] sm:$0xff]  ;;  %v597_v4 = vld [vmem:[%s2808_s28 + $0x18] sm:$0xff]  ;;  %s3085_s21 = sld [smem:[#allocation28_spill]]  ;;  %s3086_s17 = sld [smem:[#allocation31_spill]] }
  0xbf   : > { %2013 = vmatprep.subr.mxu1 %v2465_v0  ;;  %2015 = vmatprep.mubr.msk.f32.mxu1 %vm2466_vm0, %v2465_v0  ;;  %v596_v7 = vld [vmem:[%s2808_s28 + $0x10] sm:$0xff]  ;;  %v602_v9 = vld [vmem:[#allocation9] sm:$0xff]  ;;  %v599_v47 = vld [vmem:[%s2814_s16 + $0x8] sm:$0xff]  ;;  %s2927_s25 = sld [smem:[#allocation2]]  ;;  %s3087_s8 = sld [smem:[#allocation29_spill]]  ;;  %vm1573_vm2 = vcmask 261120  }
  0xc0   : > { %1999 = vmatpush3.xpose.msk.msra.mxu0 %vm604_vm1, %v594_v1  ;;  %2014 = vmatpush3.xpose.msk.msra.mxu1 %vm604_vm1, %v597_v4  ;;  %v598_v46 = vld [vmem:[%s2814_s16] sm:$0xff]  ;;  %v600_v54 = vld [vmem:[%s2814_s16 + $0x10] sm:$0xff]  ;;  %v601_v57 = vld [vmem:[%s2814_s16 + $0x18] sm:$0xff]  ;;  %vm1655_vm3 = vcmask 523264   ;;  %s3089_s28 = sld [smem:[#allocation32_spill]]  ;;  %s1733_s26 = scalar_lea.sflag [#allocation5], %s2794_s13 }
  0xc1   : > { %2003 = vmatprep.subr.mxu0 %v2465_v0  ;;  %2023 = vmatprep.subr.mxu1 %v2465_v0  ;;  %s3090_s16 = sld [smem:[#allocation21_spill]] }
  0xc3   : > { %p581_p6 = scmp.lt.s32.totalorder %s3083_s19, 1 }
  0xc4   : > { %v1245_v62 = vld [vmem:[%s3085_s21] sm:$0xff]  ;;  %v1246_v63 = vld [vmem:[%s3085_s21 + $0x8] sm:$0xff]  ;;  %v1248_v1 = vld [vmem:[%s3085_s21 + $0x18] sm:$0xff] }
  0xc5   : > { %s582_s14 = scalar_select %p581_p6, %s3083_s19, 1  ;;  %v1247_v4 = vld [vmem:[%s3085_s21 + $0x10] sm:$0xff] }
  0xc7   : > { %s1959_s11 = sshll.u32 %s582_s14, 5  ;;  %s1954_s14 = sshll.u32 %s3083_s19, 7 }
  0xc8   : > { %s588_s9 = scalar_lea.vmem %s3084_s6, %s1959_s11  ;;  %s580_s11 = scalar_lea.vmem [#allocation12], %s1924_s2 }
  0xc9   : > { %v590_v2 = vld [vmem:[%s588_s9] sm:$0xff]  ;;  %v593_v5 = vld [vmem:[%s588_s9 + $0x18] sm:$0xff]  ;;  %v591_v6 = vld [vmem:[%s588_s9 + $0x8] sm:$0xff]  ;;  %s1747_s10 = sshll.u32 %s580_s11, 4  ;;  %p3092_p2 = scmp.ne.s32.totalorder %s3090_s16, 0  ;;  %s2955_s10 = int_to_ptr.vmem [resolvable:$true] %s1747_s10 }
  0xca   : > { %2001 = vmatmul.mubr.msk.f32.vlgmr.msra.gmra.mrb[0].mxu0 %vm604_vm1, %v590_v2  ;;  %2016 = vmatmul.mubr.msk.f32.vlgmr.msra.gmra.mrb[0].mxu1 %vm604_vm1, %v593_v5  ;;  %v592_v8 = vld [vmem:[%s588_s9 + $0x10] sm:$0xff]  ;;  %s3091_s9 = sld [smem:[#allocation33_spill]]  ;;  %s2366_s18 = scalar_lea.vmem %s2955_s10, 128 }
  0xcb   : > { %2004 = vmatpush3.xpose.msk.msra.mxu0 %vm604_vm1, %v595_v3  ;;  %2005 = vmatprep.mubr.msk.f32.mxu0 %vm2466_vm0, %v2465_v0  ;;  %p2367_p5 = scmp.ne.s32.totalorder %s2955_s10, %s2366_s18  ;;  %s2468_s2 = smov [#allocation12]  }
  0xcc   : > { %2008 = vmatprep.subr.mxu0 %v2465_v0  ;;  %2025 = vmatprep.mubr.msk.f32.mxu1 %vm2466_vm0, %v2465_v0  ;;  %s2370_s19 = sshll.u32 %s2468_s2, 4  ;;  %s2371_s19 = int_to_ptr.vmem [resolvable:$false] %s2370_s19 }
  0xcd   : > { %2024 = vmatpush3.msra.mxu1 %v599_v47  ;;  %p2368_p9 = pnand %p2367_p5, %p3092_p2  ;;  %p2373_p1 = scmp.lt.s32.totalorder %s2955_s10, %s2371_s19 }
  0xce   : > { %2006 = vmatmul.mubr.msk.f32.vlgmr.msra.gmra.mrb[2].mxu0 %vm604_vm1, %v591_v6  ;;  %2033 = vmatprep.subr.mxu1 %v2465_v0 }
  0xcf   : > { %2009 = vmatpush3.xpose.msk.msra.mxu0 %vm604_vm1, %v596_v7  ;;  %2010 = vmatprep.mubr.msk.f32.mxu0 %vm2466_vm0, %v2465_v0  ;;  %p2369_p10 = pneg %p2368_p9 }
  0xd0   : > { %2018 = vmatprep.subr.mxu0 %v2465_v0 }
  0xd2   : > { %2011 = vmatmul.mubr.msk.f32.vlgmr.msra.gmra.mrb[4].mxu0 %vm604_vm1, %v592_v8 }
  0xd3   : > { %2020 = vmatprep.mubr.msk.f32.mxu0 %vm2466_vm0, %v2465_v0  ;;  %2019 = vmatpush3.msra.mxu0 %v598_v46 }
  0xd4   : > { %2028 = vmatprep.subr.mxu0 %v2465_v0 }
 0x19d   : > { %v677_v10 = vpop.f32.mrb[0].mxu0  ;;  %v905_v13 = vpop.f32.mrb[0].mxu1 }
 0x19e   : > { %v678_v11 = vadd.f32 %v677_v10, %v602_v9  ;;  %v2002_v12 = vpop.f32.mrb[1].mxu0  ;;  %v2017_v15 = vpop.f32.mrb[1].mxu1  ;;  %v906_v23 = vadd.f32 %v905_v13, %v602_v9 }
 0x19f   : > { %v1555_v12 = vld [vmem:[#allocation11 + $0x8] sm:$0xff]  ;;  %v1556_v15 = vld [vmem:[#allocation11 + $0x10] sm:$0xff] }
 0x1a0   : > { %v909_v14 = vsel %vm604_vm1, %v678_v11, -inf  ;;  %v918_v25 = vsel %vm604_vm1, %v906_v23, -inf }
 0x1a1   : > { %910 = vmax.xlane.f32.xlu0 %v909_v14  ;;  %v753_v16 = vpop.f32.mrb[2].mxu0  ;;  %v2467_v14 = vmov 0.0|0.0  }
 0x1a2   : > { %v754_v17 = vadd.f32 %v753_v16, %v602_v9  ;;  %v2007_v18 = vpop.f32.mrb[3].mxu0  ;;  %v1557_v16 = vld [vmem:[#allocation11 + $0x18] sm:$0xff] }
 0x1a3   : > { %v1558_v18 = vld [vmem:[%s3086_s17] sm:$0xff] }
 0x1a4   : > { %v912_v19 = vsel %vm604_vm1, %v754_v17, -inf }
 0x1a5   : > { %913 = vmax.xlane.f32.xlu0 %v912_v19  ;;  %v829_v20 = vpop.f32.mrb[4].mxu0  ;;  %v1560_v19 = vld [vmem:[%s3086_s17 + $0x10] sm:$0xff] }
 0x1a6   : > { %v830_v21 = vadd.f32 %v829_v20, %v602_v9  ;;  %v2012_v22 = vpop.f32.mrb[5].mxu0 }
 0x1a8   : > { %v915_v24 = vsel %vm604_vm1, %v830_v21, -inf }
 0x1a9   : > { %916 = vmax.xlane.f32.xlu1 %v915_v24  ;;  %v1563_v24 = vld [vmem:[%s3086_s17 + $0x28] sm:$0xff] }
 0x1ad   : > { %919 = vmax.xlane.f32.xlu1 %v918_v25 }
 0x22e   : > { %v911_v26 = vpop.xlane.xlu0 %910 }
 0x22f   : > { %v921_v27 = vsub.f32 %v678_v11, %v911_v26  ;;  %v1554_v11 = vld [vmem:[#allocation11] sm:$0xff] }
 0x230   : > { %v2089_v13 = vpack.c.bf16 %v1555_v12, %v1554_v11 }
 0x231   : > { %v925_v28 = vmul.f32 1.442695, %v921_v27 }
 0x232   : > { %v914_v29 = vpop.xlane.xlu0 %913 }
 0x233   : > { %2204 = vpow2.f32 %v925_v28  ;;  %v922_v30 = vsub.f32 %v754_v17, %v914_v29  ;;  %v2092_v17 = vpack.c.bf16 %v1557_v16, %v1556_v15 }
 0x235   : > { %v927_v31 = vmul.f32 1.442695, %v922_v30 }
 0x236   : > { %v917_v32 = vpop.xlane.xlu1 %916 }
 0x237   : > { %2206 = vpow2.f32 %v927_v31  ;;  %v923_v33 = vsub.f32 %v830_v21, %v917_v32  ;;  %v1561_v21 = vld [vmem:[%s3086_s17 + $0x18] sm:$0xff] }
 0x238   : > { %v2098_v22 = vpack.c.bf16 %v1561_v21, %v1560_v19 }
 0x239   : > { %v929_v34 = vmul.f32 1.442695, %v923_v33 }
 0x23a   : > { %v920_v35 = vpop.xlane.xlu1 %919 }
 0x23b   : > { %2208 = vpow2.f32 %v929_v34  ;;  %v924_v36 = vsub.f32 %v906_v23, %v920_v35  ;;  %v1562_v23 = vld [vmem:[%s3086_s17 + $0x20] sm:$0xff] }
 0x23c   : > { %v2101_v25 = vpack.c.bf16 %v1563_v24, %v1562_v23  ;;  %v1948_v35 = vld [vmem:[%s3087_s8] ss:$0 sm:$0xff]  ;;  %s2372_s8 = scalar_lea.vmem %s2371_s19, 256 }
 0x23d   : > { %v2205_v37 = vpop.eup %2204  ;;  %v931_v38 = vmul.f32 1.442695, %v924_v36  ;;  %p2374_p4 = scmp.lt.s32.totalorder %s2372_s8, %s2366_s18 }
 0x23e   : > { %v933_v39 = vsel %vm604_vm1, %v2205_v37, 0.0 }
 0x23f   : > { %2210 = vpow2.f32 %v931_v38  ;;  %934 = vadd.xlane.f32.xlu0 %v933_v39  ;;  %v1551_v38 = vstv %s2927_s25  ;;  %s2953_s25 = scalar_lea.hbm %s3091_s9, %s1954_s14  ;;  %p2375_p0 = por %p2374_p4, %p2373_p1 }
 0x241   : > { %v2207_v40 = vpop.eup %2206  ;;  %p2376_p7 = pnand %p2375_p0, %p2369_p10 }
 0x242   : > { %v936_v41 = vsel %vm604_vm1, %v2207_v40, 0.0 }
 0x243   : > { %937 = vadd.xlane.f32.xlu1 %v936_v41 }
 0x245   : > { %v2209_v42 = vpop.eup %2208 }
 0x246   : > { %v939_v43 = vsel %vm604_vm1, %v2209_v42, 0.0 }
 0x247   : > { %940 = vadd.xlane.f32.xlu0 %v939_v43  ;;  %v1564_v43 = vld [vmem:[%s3086_s17 + $0x30] sm:$0xff] }
 0x249   : > { %v2211_v44 = vpop.eup %2210 }
 0x24a   : > { %v942_v45 = vsel %vm604_vm1, %v2211_v44, 0.0 }
 0x24b   : > { %943 = vadd.xlane.f32.xlu1 %v942_v45 }
 0x2cc   : > { %v935_v48 = vpop.xlane.xlu0 %934 }
 0x2cd   : > { %2212 = vrcp.f32 %v935_v48 }
 0x2d0   : > { %v938_v49 = vpop.xlane.xlu1 %937 }
 0x2d1   : > { %2214 = vrcp.f32 %v938_v49 }
 0x2d4   : > { %v941_v50 = vpop.xlane.xlu0 %940 }
 0x2d5   : > { %2216 = vrcp.f32 %v941_v50 }
 0x2d7   : > { %v2213_v51 = vpop.eup %2212 }
 0x2d8   : > { %v949_v52 = vmul.f32 %v2213_v51, %v2205_v37  ;;  %v944_v53 = vpop.xlane.xlu1 %943  ;;  %v1951_v51 = vld [vmem:[%s3089_s28] ss:$0 sm:$0xff] }
 0x2d9   : > { %2218 = vrcp.f32 %v944_v53 }
 0x2da   : > { %2021 = vmatmul.mubr.msk.f32.vlgmr.msra.gmra.mrb[6].mxu0 %vm604_vm1, %v949_v52 }
 0x2db   : > { %v2215_v55 = vpop.eup %2214  ;;  %2029 = vmatpush3.msra.mxu0 %v600_v54  ;;  %2030 = vmatprep.mubr.msk.f32.mxu0 %vm2466_vm0, %v2465_v0 }
 0x2dc   : > { %v950_v56 = vmul.f32 %v2215_v55, %v2207_v40  ;;  %2038 = vmatprep.subr.mxu0 %v2465_v0  ;;  %v589_v40 = vld [vmem:[%s2800_s20] sm:$0xff]  ;;  %s3088_s20 = sld [smem:[#allocation30_spill]] }
 0x2de   : > { %2026 = vmatmul.mubr.msk.f32.vlgmr.msra.gmra.mrb[2].mxu1 %vm604_vm1, %v950_v56 }
 0x2df   : > { %v2217_v58 = vpop.eup %2216  ;;  %2034 = vmatpush3.msra.mxu1 %v601_v57  ;;  %2035 = vmatprep.mubr.msk.f32.mxu1 %vm2466_vm0, %v2465_v0 }
 0x2e0   : > { %v951_v59 = vmul.f32 %v2217_v58, %v2209_v42  ;;  %2043 = vmatprep.subr.mxu1 %v2465_v0 }
 0x2e2   : > { %2031 = vmatmul.mubr.msk.f32.vlgmr.msra.gmra.mrb[8].mxu0 %vm604_vm1, %v951_v59  ;;  %v1949_v46 = vld [vmem:[%s3088_s20] ss:$0 sm:$0xff] }
 0x2e3   : > { %v2219_v60 = vpop.eup %2218  ;;  %2040 = vmatprep.mubr.msk.f32.mxu0 %vm2466_vm0, %v2465_v0  ;;  %2039 = vmatpush3.msra.mxu0 %v1246_v63 }
 0x2e4   : > { %v952_v61 = vmul.f32 %v2219_v60, %v2211_v44  ;;  %2048 = vmatprep.subr.mxu0 %v2465_v0  ;;  %v1565_v44 = vld [vmem:[%s3086_s17 + $0x38] sm:$0xff] }
 0x2e5   : > { %v2104_v45 = vpack.c.bf16 %v1565_v44, %v1564_v43 }
 0x2e6   : > { %2036 = vmatmul.mubr.msk.f32.vlgmr.msra.gmra.mrb[4].mxu1 %vm604_vm1, %v952_v61 }
 0x2e7   : > { %2045 = vmatprep.mubr.msk.f32.mxu1 %vm2466_vm0, %v2465_v0  ;;  %2044 = vmatpush3.msra.mxu1 %v1245_v62 }
 0x2e8   : > { %2053 = vmatprep.subr.mxu1 %v2465_v0 }
 0x3ad   : > { %v1022_v2 = vpop.f32.mrb[6].mxu0 }
 0x3ae   : > { %v2022_v3 = vpop.f32.mrb[7].mxu0  ;;  %2046 = vmatmul.mubr.msk.f32.vlgmr.msra.gmra.mrb[6].mxu1 %vm604_vm1, %v1022_v2 }
 0x3af   : > { %2054 = vmatpush3.msra.mxu1 %v1248_v1  ;;  %2055 = vmatprep.mubr.msk.f32.mxu1 %vm2466_vm0, %v2465_v0 }
 0x3b0   : > { %2094 = vmatprep.subr.bf16.mxu1 %v2467_v14 }
 0x3b1   : > { %v1095_v5 = vpop.f32.mrb[2].mxu1 }
 0x3b2   : > { %v2027_v6 = vpop.f32.mrb[3].mxu1  ;;  %2041 = vmatmul.mubr.msk.f32.vlgmr.msra.gmra.mrb[10].mxu0 %vm604_vm1, %v1095_v5 }
 0x3b3   : > { %2049 = vmatpush3.msra.mxu0 %v1247_v4  ;;  %2050 = vmatprep.mubr.msk.f32.mxu0 %vm2466_vm0, %v2465_v0 }
 0x3b4   : > { %2088 = vmatprep.subr.bf16.mxu0 %v2467_v14 }
 0x3b5   : > { %v1168_v7 = vpop.f32.mrb[8].mxu0 }
 0x3b6   : > { %v2032_v8 = vpop.f32.mrb[9].mxu0  ;;  %2051 = vmatmul.mubr.msk.f32.vlgmr.msra.gmra.mrb[12].mxu0 %vm604_vm1, %v1168_v7 }
 0x3b7   : > { %2066 = vmatprep.mubr.msk.f32.mxu0 %vm2466_vm0, %v2465_v0  ;;  %2090 = vmatpush3.bf16.msra.mxu0 %v2089_v13 }
 0x3b8   : > { %2091 = vmatprep.subr.bf16.mxu0 %v2467_v14 }
 0x3b9   : > { %v1241_v9 = vpop.f32.mrb[4].mxu1 }
 0x3ba   : > { %v2037_v10 = vpop.f32.mrb[5].mxu1  ;;  %2056 = vmatmul.mubr.msk.f32.vlgmr.msra.gmra.mrb[8].mxu1 %vm604_vm1, %v1241_v9 }
 0x3bb   : > { %2085 = vmatprep.mubr.msk.f32.mxu1 %vm2466_vm0, %v2465_v0  ;;  %2093 = vmatpush3.bf16.msra.mxu0 %v2092_v17  ;;  %v1559_v0 = vld [vmem:[%s3086_s17 + $0x8] sm:$0xff] }
 0x3bc   : > { %v2095_v20 = vpack.c.bf16 %v1559_v0, %v1558_v18 }
 0x3be   : > { %2096 = vmatpush3.bf16.msra.mxu1 %v2095_v20 }
 0x3bf   : > { %2097 = vmatprep.subr.bf16.mxu1 %v2467_v14 }
 0x3c2   : > { %2099 = vmatpush3.bf16.msra.mxu1 %v2098_v22 }
 0x3c3   : > { %2100 = vmatprep.subr.bf16.mxu1 %v2467_v14 }
 0x3c6   : > { %2102 = vmatpush3.bf16.msra.mxu1 %v2101_v25 }
 0x3c7   : > { %2103 = vmatprep.subr.bf16.mxu1 %v2467_v14 }
 0x3ca   : > { %2105 = vmatpush3.bf16.msra.mxu1 %v2104_v45 }
 0x481   : > { %v1391_v26 = vpop.f32.mrb[6].mxu1 }
 0x482   : > { %v2047_v27 = vpop.f32.mrb[7].mxu1 }
 0x485   : > { %v1318_v28 = vpop.f32.mrb[10].mxu0 }
 0x486   : > { %v1392_v29 = vadd.f32 %v1391_v26, %v1318_v28  ;;  %v2042_v30 = vpop.f32.mrb[11].mxu0 }
 0x489   : > { %v1464_v31 = vpop.f32.mrb[12].mxu0 }
 0x48a   : > { %v1468_v32 = vadd.f32 %v1464_v31, %v1392_v29  ;;  %v2052_v33 = vpop.f32.mrb[13].mxu0 }
 0x48d   : > { %v1538_v34 = vpop.f32.mrb[8].mxu1 }
 0x48e   : > { %v1542_v36 = vadd.f32 %v1538_v34, %v1468_v32  ;;  %v2057_v37 = vpop.f32.mrb[9].mxu1 }
 0x490   : > { %v1550_v39 = vadd.f32 %v1948_v35, %v1542_v36 }
 0x492   : > { %v1552_v41 = vmul.f32 %v1551_v38, %v1550_v39 }
 0x494   : > { %v1553_v42 = vadd.f32 %v1552_v41, %v589_v40 }
 0x496   : > { %2067 = vmatmul.mubr.msk.f32.vlgmr.msra.gmra.mrb[14].mxu0 %vm1573_vm2, %v1553_v42 }
 0x569   : > { %v1643_v47 = vpop.f32.mrb[14].mxu0 }
 0x56a   : > { %v1644_v48 = vadd.f32 %v1949_v46, %v1643_v47  ;;  %v2068_v49 = vpop.f32.mrb[15].mxu0 }
 0x56c   : > { %v1647_v50 = vmax.f32 %v1644_v48, 0.0 }
 0x56e   : > { %2086 = vmatmul.mubr.msk.f32.vlgmr.msra.gmra.mrb[10].mxu1 %vm1655_vm3, %v1647_v50 }
 0x641   : > { %v1725_v52 = vpop.f32.mrb[10].mxu1 }
 0x642   : > { %v1726_v53 = vadd.f32 %v1951_v51, %v1725_v52  ;;  %v2087_v54 = vpop.f32.mrb[11].mxu1 }
 0x644   : > { %v1729_v55 = vmul.f32 %v1726_v53, %v1551_v38 }
 0x646   : > { %v1730_v56 = vadd.f32 %v1729_v55, %v1553_v42 }
 0x648   : > { %1731 = vst.msk [vmem:[%s580_s11] sm:$0xff] %vm1573_vm2, %v1730_v56 }
 0x649   : > { %2379 = shalt.err (!%p2376_p7)
}
 0x64a   : > { %s2380_s13 = scalar_lea.hbm %s2953_s25, 128  ;;  %s2384_s30 = scalar_lea.hbm %s3091_s9, 256 }
 0x64b   : > { %p2381_p8 = scmp.ne.s32.totalorder %s2953_s25, %s2380_s13  ;;  %p2385_p11 = scmp.lt.u32.totalorder %s2953_s25, %s3091_s9 }
 0x64c   : > { %p2386_p13 = scmp.lt.u32.totalorder %s2384_s30, %s2380_s13  ;;  %p2388_p5 = scmp.lt.u32.totalorder %s2380_s13, %s2953_s25 }
 0x64d   : > { %p2382_p12 = pnand %p2381_p8, %p3092_p2 }
 0x64e   : > { %p2387_p6 = por %p2386_p13, %p2385_p11 }
 0x64f   : > { %p2383_p3 = pneg %p2382_p12 }
 0x650   : > { %p2389_p9 = por %p2388_p5, %p2387_p6 }
 0x652   : > { %p2390_p10 = pnand %p2389_p9, %p2383_p3 }
 0x654   : > { %2393 = shalt.err (!%p2390_p10)
}
 0x655   : > { %2120 = dma.vmem_to_hbm [thread:$0]  (%p3092_p2), %s2955_s10, 128, %s2953_s25, %s1733_s26  }
 0x656 PF: > { %s3093_s1 = sld [smem:[#allocation17_spill]]  ;;  %s3094_s20 = sld [smem:[#allocation22_spill]] }
 0x657   : > { %s3095_s23 = sld [smem:[#allocation20_spill]] }
 0x65c   : > { %s1759_s12 = sand.u32 1, %s3093_s1   ;;  %p3096_p1 = scmp.ne.s32.totalorder %s3094_s20, 0 }
 0x65d   : > { %p3097_p4 = scmp.ge.s32.totalorder %s3095_s23, 2  ;;  %s1760_s28 = scalar_lea.sflag [#allocation5], %s1759_s12 }
 0x65f   : > { %p2140_p0 = pnand %p3097_p4, %p3096_p1 }
 0x661   : > { %2431 = dma.done.wait (!%p2140_p0), %s1760_s28, 128  }
 0x662   : > { %2433 = vsyncadd (!%p2140_p0), %s1760_s28, 4294967168  ;;  %s33_s28 = sadd.s32 1, %s3095_s23   ;;  %s3098_s14 = sld [smem:[#allocation18_spill]] }
 0x663   : > { %p30_p7 = scmp.ge.s32.totalorder %s33_s28, 4   ;;  %s3099_s25 = sld [smem:[#allocation24_spill]] }
 0x664   : > { %s3100_s16 = sld [smem:[#allocation23_spill]]  ;;  %s3101_s23 = smov %s2440_s24 }
 0x665   : > { %s3103_s26 = smov %s2452_s27  ;;  %32 = sbr.rel (!%p30_p7) target bundleno = 20 (0x14), region = 149 }
 0x668   : > { %s3102_s24 = smov %s3098_s14 }
 0x66a   : > { %s3104_s27 = smov %s3100_s16 }
 0x66c   :  { %1765 = vsyncpa [#allocation4], 1 }
 0x66d   :  { %1767 = vsyncpa [#allocation4 + $0x1], 1 }
 0x66e   :  { %1768 = vsyncpa [#allocation7], 1 }
 0x66f   :  { %1770 = vsyncpa [#allocation7 + $0x1], 1 }
 0x670   :  { %1771 = vsyncpa [#allocation10], 1 }
 0x671   :  { %1772 = vsyncpa [#allocation5], 1 }
 0x672   :  { %1774 = vsyncpa [#allocation5 + $0x1], 1 }

</bundles_post_ra>
